<compile_context>
chip_gen: v7x
topology: tpu7x:2x2x1
jax: 0.10.0
libtpu: 0.0.40
codegen_flags: <defaults>
</compile_context>

<pallas_src>
import functools

import jax
import jax.numpy as jnp
from jax.experimental import pallas as pl
from jax.experimental.pallas import tpu as pltpu


def _round_up(x, m):
    return ((x + m - 1) // m) * m


# -----------------------------------------------------------------------------
# Fused kernel (no grid, all operands resident in VMEM):
#   img_rows = gap_rows @ W_img_aug                (R_PAD, H)      MXU  (b_img folded)
#   seq      = tanh(emb_masked + img_rows)         (R_PAD, H)      VPU + EUP
#   tok      = seq @ W_heads + b_heads             (R_PAD, 128)    MXU  -> out[:R_PAD]
#   sent     = pool_w @ tok                        (B_PAD, 128)    MXU  -> out[R_PAD:]
# pool_w is built in-kernel from iota + the SMEM alpha scalar; its rows sum to 1,
# so pooling the token slab is numerically equivalent to (pooled @ W_sent + b_sent).
# W_heads columns [0:Lt] = token head, [Lt:Lt+Ls] = sentence head, rest zero.
# -----------------------------------------------------------------------------
def fused_forward_kernel(alpha_ref, emb_ref, gapr_ref, w_img_ref, w_heads_ref,
                         b_heads_ref, out_ref, *, seq_len):
    R_PAD, _ = emb_ref.shape
    B_PAD = out_ref.shape[0] - R_PAD

    # image projection, already repeated per token row wrapper-side (bias folded
    # via the ones column of gap_rows / last row of w_img_aug)
    img_rows = jnp.dot(gapr_ref[...], w_img_ref[...],
                       preferred_element_type=jnp.float32)                # (R_PAD, H)
    # synthetic additive multimodal fusion + tanh
    seq2d = jnp.tanh(emb_ref[...] + img_rows)                             # (R_PAD, H)

    # token-head slab: lane-dense, 8-row-aligned -> unmasked stores
    tok = jnp.dot(seq2d, w_heads_ref[...],
                  preferred_element_type=jnp.float32) + b_heads_ref[...]  # (R_PAD, 128)
    out_ref[:R_PAD, :] = tok

    # alpha-blended mean/CLS pooling applied to the already-computed token slab.
    # pool_w built in-kernel from iota (no HBM operand, no wrapper ops).
    alpha = alpha_ref[0, 0]
    b_idx = jax.lax.broadcasted_iota(jnp.int32, (B_PAD, R_PAD), 0)
    r_idx = jax.lax.broadcasted_iota(jnp.int32, (B_PAD, R_PAD), 1)
    start = b_idx * seq_len
    in_blk = jnp.logical_and(r_idx >= start, r_idx < start + seq_len)
    is_cls = (r_idx == start)
    pool_w = ((alpha / seq_len) * in_blk.astype(jnp.float32)
              + (1.0 - alpha) * is_cls.astype(jnp.float32))               # (B_PAD, R_PAD)
    out_ref[R_PAD:, :] = jnp.dot(pool_w, tok,
                                 preferred_element_type=jnp.float32)


def fused_forward_call(alpha, emb2d, gap_rows, w_img_aug, w_heads, b_heads,
                       *, seq_len, b_pad):
    R_PAD, _ = emb2d.shape
    LPAD = w_heads.shape[1]
    kernel = functools.partial(fused_forward_kernel, seq_len=seq_len)
    return pl.pallas_call(
        kernel,
        out_shape=jax.ShapeDtypeStruct((R_PAD + b_pad, LPAD), jnp.float32),
        in_specs=[
            pl.BlockSpec(memory_space=pltpu.MemorySpace.SMEM),   # alpha (1,1) scalar
            pl.BlockSpec(memory_space=pltpu.MemorySpace.VMEM),   # emb_masked2d
            pl.BlockSpec(memory_space=pltpu.MemorySpace.VMEM),   # gap_rows (+ones col)
            pl.BlockSpec(memory_space=pltpu.MemorySpace.VMEM),   # w_img_aug
            pl.BlockSpec(memory_space=pltpu.MemorySpace.VMEM),   # w_heads (padded)
            pl.BlockSpec(memory_space=pltpu.MemorySpace.VMEM),   # b_heads (padded)
        ],
        out_specs=pl.BlockSpec(memory_space=pltpu.MemorySpace.VMEM),
    )(alpha, emb2d, gap_rows, w_img_aug, w_heads, b_heads)


# -----------------------------------------------------------------------------
# Parameter init (deterministic, synthetic).  Padded / fused weights are built
# HERE, once, instead of on every forward call.
# -----------------------------------------------------------------------------
def init_params(key, vocab, n_types, C, H, Lt, Ls):
    ks = jax.random.split(key, 5)
    scale = 0.02
    word_emb = scale * jax.random.normal(ks[0], (vocab, H), jnp.float32)
    type_emb = scale * jax.random.normal(ks[1], (n_types, H), jnp.float32)
    w_img = scale * jax.random.normal(ks[2], (C, H), jnp.float32)
    b_img = jnp.zeros((1, H), jnp.float32)
    w_tok = scale * jax.random.normal(ks[3], (H, Lt), jnp.float32)
    b_tok = jnp.zeros((1, Lt), jnp.float32)
    w_sent = scale * jax.random.normal(ks[4], (H, Ls), jnp.float32)
    b_sent = jnp.zeros((1, Ls), jnp.float32)

    # fused, lane-dense head weights: cols [0:Lt]=token head, [Lt:Lt+Ls]=sentence head
    LPAD = max(128, _round_up(Lt + Ls, 128))
    w_heads = jnp.zeros((H, LPAD), jnp.float32)
    w_heads = w_heads.at[:, :Lt].set(w_tok)
    w_heads = w_heads.at[:, Lt:Lt + Ls].set(w_sent)
    b_heads = jnp.zeros((1, LPAD), jnp.float32)
    b_heads = b_heads.at[:, :Lt].set(b_tok)
    b_heads = b_heads.at[:, Lt:Lt + Ls].set(b_sent)

    return {
        "word_emb": word_emb, "type_emb": type_emb,
        "w_img": w_img, "b_img": b_img,
        "w_tok": w_tok, "b_tok": b_tok,
        "w_sent": w_sent, "b_sent": b_sent,
        # precomputed once (hoisted out of the per-call hot path):
        "w_img_aug": jnp.concatenate([w_img, b_img], axis=0),   # (C+1, H), b_img folded
        "w_heads": w_heads, "b_heads": b_heads,
        "alpha": jnp.array([[0.5]], jnp.float32),   # nn.Parameter(torch.tensor(0.5))
    }


def forward(params, input_ids, attention_mask, token_type_ids, image_tensor):
    B, S = input_ids.shape
    H = params["word_emb"].shape[1]
    Lt = params["w_tok"].shape[1]
    Ls = params["w_sent"].shape[1]
    R = B * S
    R_PAD = _round_up(R, 8)
    B_PAD = _round_up(B, 8)

    # --- glue: embedding gathers + attention-mask fold (XLA fuses these) ---
    text_emb = (jnp.take(params["word_emb"], input_ids, axis=0)
                + jnp.take(params["type_emb"], token_type_ids, axis=0))
    mask = attention_mask.astype(jnp.float32)[:, :, None]
    emb2d = (text_emb * mask).reshape(R, H)                          # (B*S, H)

    # --- image GAP + per-token row repeat with a ones column (folds b_img) ---
    gap = jnp.mean(image_tensor, axis=(2, 3))                        # (B, C)
    gap_aug = jnp.concatenate([gap, jnp.ones((B, 1), jnp.float32)], axis=1)
    gap_rows = jnp.repeat(gap_aug, S, axis=0)                        # (B*S, C+1)

    if R_PAD > R:
        emb2d = jnp.pad(emb2d, ((0, R_PAD - R), (0, 0)))
        gap_rows = jnp.pad(gap_rows, ((0, R_PAD - R), (0, 0)))

    # --- single fused Pallas kernel ---
    slab = fused_forward_call(params["alpha"], emb2d, gap_rows,
                              params["w_img_aug"], params["w_heads"],
                              params["b_heads"], seq_len=S, b_pad=B_PAD)

    token_logits = slab[:R, :Lt].reshape(B, S, Lt)
    sent_logits = slab[R_PAD:R_PAD + B, Lt:Lt + Ls]
    return token_logits, sent_logits


def forward_reference(params, input_ids, attention_mask, token_type_ids,
                      image_tensor):
    """Pure-jnp reference of the same math, for correctness checking."""
    text_emb = (jnp.take(params["word_emb"], input_ids, axis=0)
                + jnp.take(params["type_emb"], token_type_ids, axis=0))
    mask = attention_mask.astype(jnp.float32)[:, :, None]
    gap = jnp.mean(image_tensor, axis=(2, 3))                     # (B, C)
    img_feat = gap @ params["w_img"] + params["b_img"]            # (B, H)
    seq = jnp.tanh(text_emb * mask + img_feat[:, None, :])        # (B, S, H)
    tok = seq @ params["w_tok"] + params["b_tok"]
    alpha = params["alpha"][0, 0]
    pooled = seq.mean(axis=1) * alpha + seq[:, 0, :] * (1.0 - alpha)
    sent = pooled @ params["w_sent"] + params["b_sent"]
    return tok, sent


if __name__ == "__main__":
    B, S, H = 2, 8, 128          # batch, seq len, hidden dim
    V, T = 100, 2                # vocab, token-type vocab
    C, IH, IW = 4, 16, 16        # image NCHW
    Lt, Ls = 16, 4               # num_token_labels, num_sentence_labels

    key = jax.random.PRNGKey(0)
    k_param, k_ids, k_img = jax.random.split(key, 3)

    params = init_params(k_param, V, T, C, H, Lt, Ls)

    input_ids = jax.random.randint(k_ids, (B, S), 0, V, dtype=jnp.int32)
    attention_mask = jnp.ones((B, S), dtype=jnp.int32)
    token_type_ids = jnp.zeros((B, S), dtype=jnp.int32)
    image_tensor = jax.random.normal(k_img, (B, C, IH, IW), dtype=jnp.float32)

    forward_jit = jax.jit(forward)
    token_logits, sent_logits = forward_jit(params, input_ids, attention_mask,
                                            token_type_ids, image_tensor)
    jax.block_until_ready((token_logits, sent_logits))

    tok_ref, sent_ref = forward_reference(params, input_ids, attention_mask,
                                          token_type_ids, image_tensor)
    assert token_logits.shape == (B, S, Lt)
    assert sent_logits.shape == (B, Ls)
    assert jnp.allclose(token_logits, tok_ref, atol=1e-4, rtol=1e-4)
    assert jnp.allclose(sent_logits, sent_ref, atol=1e-4, rtol=1e-4)

    print("KERNEL_OK")
</pallas_src>

<mosaic_0001>
module attributes {stable_mosaic.version = 11 : i64} {
  func.func @fused_forward_kernel(%arg0: memref<1x1xf32, #tpu.memory_space<smem>>, %arg1: memref<16x128xf32, #tpu.memory_space<vmem>>, %arg2: memref<16x5xf32, #tpu.memory_space<vmem>>, %arg3: memref<5x128xf32, #tpu.memory_space<vmem>>, %arg4: memref<128x128xf32, #tpu.memory_space<vmem>>, %arg5: memref<1x128xf32, #tpu.memory_space<vmem>>, %arg6: memref<24x128xf32, #tpu.memory_space<vmem>>) attributes {dimension_semantics = [], scalar_prefetch = 0 : i64, scratch_operands = 0 : i64, tpu.core_type = #tpu.core_type<tc>} {
    %c0 = arith.constant 0 : index
    %c0_0 = arith.constant 0 : index
    %0 = vector.load %arg2[%c0, %c0_0] : memref<16x5xf32, #tpu.memory_space<vmem>>, vector<16x5xf32>
    %c0_1 = arith.constant 0 : index
    %c0_2 = arith.constant 0 : index
    %1 = vector.load %arg3[%c0_1, %c0_2] : memref<5x128xf32, #tpu.memory_space<vmem>>, vector<5x128xf32>
    %cst = arith.constant dense<0.000000e+00> : vector<16x128xf32>
    %2 = tpu.matmul %0, %1, %cst {dimension_numbers = #tpu.dot_dimension_numbers<[1], [0], [0], [1], [0, 0, 1, 1], [], []>} : vector<16x5xf32>, vector<5x128xf32>, vector<16x128xf32> -> vector<16x128xf32>
    %c0_3 = arith.constant 0 : index
    %c0_4 = arith.constant 0 : index
    %3 = vector.load %arg1[%c0_3, %c0_4] : memref<16x128xf32, #tpu.memory_space<vmem>>, vector<16x128xf32>
    %4 = arith.addf %3, %2 : vector<16x128xf32>
    %5 = math.tanh %4 : vector<16x128xf32>
    %c0_5 = arith.constant 0 : index
    %c0_6 = arith.constant 0 : index
    %6 = vector.load %arg4[%c0_5, %c0_6] : memref<128x128xf32, #tpu.memory_space<vmem>>, vector<128x128xf32>
    %cst_7 = arith.constant dense<0.000000e+00> : vector<16x128xf32>
    %7 = tpu.matmul %5, %6, %cst_7 {dimension_numbers = #tpu.dot_dimension_numbers<[1], [0], [0], [1], [0, 0, 1, 1], [], []>} : vector<16x128xf32>, vector<128x128xf32>, vector<16x128xf32> -> vector<16x128xf32>
    %c0_8 = arith.constant 0 : index
    %c0_9 = arith.constant 0 : index
    %8 = vector.load %arg5[%c0_8, %c0_9] : memref<1x128xf32, #tpu.memory_space<vmem>>, vector<1x128xf32>
    %9 = vector.broadcast %8 : vector<1x128xf32> to vector<16x128xf32>
    %10 = arith.addf %7, %9 : vector<16x128xf32>
    %c0_10 = arith.constant 0 : index
    %c0_11 = arith.constant 0 : index
    %11 = vector.load %arg6[%c0_10, %c0_11] : memref<24x128xf32, #tpu.memory_space<vmem>>, vector<16x128xf32>
    tpu.vector_store %arg6[%c0_10, %c0_11], %10 {strides = array<i32>} : memref<24x128xf32, #tpu.memory_space<vmem>>, vector<16x128xf32>,
    %c0_12 = arith.constant 0 : index
    %c0_13 = arith.constant 0 : index
    %12 = memref.load %arg0[%c0_12, %c0_13] : memref<1x1xf32, #tpu.memory_space<smem>>
    %13 = tpu.iota {dimensions = array<i32: 0>} : vector<8x16xi32>
    %14 = tpu.iota {dimensions = array<i32: 1>} : vector<8x16xi32>
    %c8_i32 = arith.constant 8 : i32
    %15 = vector.broadcast %c8_i32 : i32 to vector<8x16xi32>
    %16 = arith.muli %13, %15 : vector<8x16xi32>
    %17 = arith.cmpi sge, %14, %16 : vector<8x16xi32>
    %c8_i32_14 = arith.constant 8 : i32
    %18 = vector.broadcast %c8_i32_14 : i32 to vector<8x16xi32>
    %19 = arith.addi %16, %18 : vector<8x16xi32>
    %20 = arith.cmpi slt, %14, %19 : vector<8x16xi32>
    %21 = arith.andi %17, %20 : vector<8x16xi1>
    %22 = arith.cmpi eq, %14, %16 : vector<8x16xi32>
    %cst_15 = arith.constant 8.000000e+00 : f32
    %23 = arith.divf %12, %cst_15 : f32
    %24 = arith.extui %21 : vector<8x16xi1> to vector<8x16xi32>
    %25 = arith.sitofp %24 : vector<8x16xi32> to vector<8x16xf32>
    %26 = vector.broadcast %23 : f32 to vector<8x16xf32>
    %27 = arith.mulf %26, %25 : vector<8x16xf32>
    %cst_16 = arith.constant 1.000000e+00 : f32
    %28 = arith.subf %cst_16, %12 : f32
    %29 = arith.extui %22 : vector<8x16xi1> to vector<8x16xi32>
    %30 = arith.sitofp %29 : vector<8x16xi32> to vector<8x16xf32>
    %31 = vector.broadcast %28 : f32 to vector<8x16xf32>
    %32 = arith.mulf %31, %30 : vector<8x16xf32>
    %33 = arith.addf %27, %32 : vector<8x16xf32>
    %cst_17 = arith.constant dense<0.000000e+00> : vector<8x128xf32>
    %34 = tpu.matmul %33, %10, %cst_17 {dimension_numbers = #tpu.dot_dimension_numbers<[1], [0], [0], [1], [0, 0, 1, 1], [], []>} : vector<8x16xf32>, vector<16x128xf32>, vector<8x128xf32> -> vector<8x128xf32>
    %c16 = arith.constant 16 : index
    %c0_18 = arith.constant 0 : index
    %35 = vector.load %arg6[%c16, %c0_18] : memref<24x128xf32, #tpu.memory_space<vmem>>, vector<8x128xf32>
    tpu.vector_store %arg6[%c16, %c0_18], %34 {strides = array<i32>} : memref<24x128xf32, #tpu.memory_space<vmem>>, vector<8x128xf32>,
    return
  }
}

</mosaic_0001>

<bundles_post_ra>
// kernel: forward.1
= control target key start
LH: loop header
LB: loop body
LE: loop exit
PB: predicated region body
PF: predicated region fallthrough
CT: control target
= control target key end

     0   :  { %vm34_vm0 = vcmask 1044480   ;;  %vm27_vm1 = vcmask 39936   ;;  %v442_v35 = vmov 0.0|0.0   ;;  %vm443_vm2 = vmmov 0   ;;  %s561_s3 = inlined_call_operand.vmem [shape: f32[5,128], index: 3, kind: input, shape index: {}]   ;;  %s562_s2 = inlined_call_operand.vmem [shape: f32[16,5], index: 2, kind: input, shape index: {}]   ;;  %s563_s4 = inlined_call_operand.vmem [shape: f32[128,128], index: 4, kind: input, shape index: {}]   ;;  %s564_s1 = inlined_call_operand.vmem [shape: f32[16,128], index: 1, kind: input, shape index: {}]   ;;  %s565_s0 = inlined_call_operand.<no memory space> [shape: f32[1,1], index: 0, kind: input, shape index: {}]   ;;  %s566_s5 = inlined_call_operand.vmem [shape: f32[1,128], index: 5, kind: input, shape index: {}]   ;;  %s567_s6 = inlined_call_operand.vmem [shape: f32[24,128], index: 6, kind: output, shape index: {}]  }
   0x1   :  { %v26_v0 = vld [vmem:[%s561_s3] sm:$0x1f]  ;;  %v25_v2 = vld [vmem:[%s562_s2 + $0x8] sm:$0xff]  ;;  %v121_v5 = vld [vmem:[%s563_s4 + $0x10] sm:$0xff]  ;;  %v444_v36 = vmov 0.0   ;;  %v220_v37 = vlaneseq  ;;  %s232_s11 = smul.f32 0.125, %s565_s0 }
   0x2   :  { %v24_v1 = vld [vmem:[%s562_s2] sm:$0xff]  ;;  %353 = vmatprep.subr.msk.mxu0 %vm34_vm0, %v26_v0  ;;  %v120_v4 = vld [vmem:[%s563_s4 + $0x8] sm:$0xff]  ;;  %v122_v7 = vld [vmem:[%s563_s4 + $0x18] sm:$0xff]  ;;  %s237_s14 = ssub.f32 1.0, %s565_s0  ;;  %vm243_vm7 = vcmask 130048  }
   0x3   :  { %355 = vmatprep.mubr.msk.f32.mxu0 %vm27_vm1, %v24_v1  ;;  %v119_v3 = vld [vmem:[%s563_s4] sm:$0xff]  ;;  %354 = vmatpush3.msk.msra.mxu0 %vm34_vm0, %v26_v0  ;;  %v404_v8 = vpack.c.bf16 %v122_v7, %v121_v5  ;;  %v124_v10 = vld [vmem:[%s563_s4 + $0x28] sm:$0xff]  ;;  %v125_v12 = vld [vmem:[%s563_s4 + $0x30] sm:$0xff]  ;;  %v221_v38 = vshrl.u32 %v220_v37, 7  ;;  %v223_v40 = vand.u32 127, %v220_v37  ;;  %v235_v44 = vstv %s232_s11 }
   0x4   :  { %v400_v6 = vpack.c.bf16 %v120_v4, %v119_v3  ;;  %356 = vmatmul.mubr.msk.f32.vlgmr.msra.gmra.mrb[0].mxu0 %vm27_vm1, %v25_v2  ;;  %v123_v9 = vld [vmem:[%s563_s4 + $0x20] sm:$0xff]  ;;  %v126_v13 = vld [vmem:[%s563_s4 + $0x38] sm:$0xff]  ;;  %v128_v16 = vld [vmem:[%s563_s4 + $0x48] sm:$0xff]  ;;  %432 = vmatprep.subr.bf16.mxu0 %v442_v35  ;;  %v240_v46 = vstv %s237_s14 }
   0x5   :  { %v408_v11 = vpack.c.bf16 %v124_v10, %v123_v9  ;;  %v412_v14 = vpack.c.bf16 %v126_v13, %v125_v12  ;;  %v127_v15 = vld [vmem:[%s563_s4 + $0x40] sm:$0xff]  ;;  %v129_v18 = vld [vmem:[%s563_s4 + $0x50] sm:$0xff]  ;;  %v130_v19 = vld [vmem:[%s563_s4 + $0x58] sm:$0xff]  ;;  %397 = vmatprep.mubr.msk.f32.mxu0 %vm443_vm2, %v444_v36  ;;  %v224_v39 = vmul.u32 8, %v221_v38 }
   0x6   :  { %401 = vmatprep.subr.bf16.mxu1 %v400_v6  ;;  %v416_v17 = vpack.c.bf16 %v128_v16, %v127_v15  ;;  %v420_v20 = vpack.c.bf16 %v130_v19, %v129_v18  ;;  %v131_v21 = vld [vmem:[%s563_s4 + $0x60] sm:$0xff]  ;;  %v132_v22 = vld [vmem:[%s563_s4 + $0x68] sm:$0xff]  ;;  %v133_v23 = vld [vmem:[%s563_s4 + $0x70] sm:$0xff] }
   0x7   :  { %403 = vmatpush3.bf16.msra.mxu1 %v400_v6  ;;  %v424_v24 = vpack.c.bf16 %v132_v22, %v131_v21  ;;  %v134_v25 = vld [vmem:[%s563_s4 + $0x78] sm:$0xff]  ;;  %v114_v27 = vld [vmem:[%s564_s1 + $0x8] sm:$0xff]  ;;  %v113_v28 = vld [vmem:[%s564_s1] sm:$0xff]  ;;  %v226_v41 = vadd.s32 8, %v224_v39  ;;  %vm225_vm3 = vcmp.ge.s32.totalorder %v223_v40, %v224_v39  ;;  %vm229_vm6 = vcmp.eq.s32.totalorder %v223_v40, %v224_v39 }
   0x8   :  { %405 = vmatprep.subr.bf16.mxu1 %v404_v8  ;;  %v428_v26 = vpack.c.bf16 %v134_v25, %v133_v23  ;;  %v325_v42 = vld [vmem:[%s566_s5] ss:$0 sm:$0xff]  ;;  %v327_v45 = vsel %vm229_vm6, 1.0, %v444_v36 }
   0x9   :  { %vm227_vm4 = vcmp.lt.s32.totalorder %v223_v40, %v226_v41  ;;  %v241_v51 = vmul.f32 %v327_v45, %v240_v46 }
   0xa   :  { %vm228_vm5 = vmand %vm225_vm3, %vm227_vm4 }
   0xb   :  { %407 = vmatpush3.bf16.msra.mxu1 %v404_v8  ;;  %v326_v43 = vsel %vm228_vm5, 1.0, %v444_v36 }
   0xc   :  { %409 = vmatprep.subr.bf16.mxu1 %v408_v11  ;;  %v236_v50 = vmul.f32 %v326_v43, %v235_v44 }
   0xe   :  { %v242_v54 = vadd.f32 %v241_v51, %v236_v50 }
   0xf   :  { %411 = vmatpush3.bf16.msra.mxu1 %v408_v11 }
  0x10   :  { %413 = vmatprep.subr.bf16.mxu1 %v412_v14 }
  0x13   :  { %415 = vmatpush3.bf16.msra.mxu1 %v412_v14 }
  0x14   :  { %417 = vmatprep.subr.bf16.mxu1 %v416_v17 }
  0x17   :  { %419 = vmatpush3.bf16.msra.mxu1 %v416_v17 }
  0x18   :  { %421 = vmatprep.subr.bf16.mxu1 %v420_v20 }
  0x1b   :  { %423 = vmatpush3.bf16.msra.mxu1 %v420_v20 }
  0x1c   :  { %425 = vmatprep.subr.bf16.mxu1 %v424_v24 }
  0x1f   :  { %427 = vmatpush3.bf16.msra.mxu1 %v424_v24 }
  0x20   :  { %429 = vmatprep.subr.bf16.mxu1 %v428_v26 }
  0x23   :  { %431 = vmatpush3.bf16.msra.mxu1 %v428_v26 }
  0xd7   :  { %v357_v29 = vpop.f32.mrb[0].mxu0 }
  0xd8   :  { %v116_v30 = vadd.f32 %v357_v29, %v114_v27  ;;  %v104_v31 = vpop.f32.mrb[1].mxu0 }
  0xd9   :  { %v115_v32 = vadd.f32 %v113_v28, %v104_v31 }
  0xdb   :  { %438 = vtanh.f32 %v115_v32 }
  0xdc   :  { %440 = vtanh.f32 %v116_v30 }
  0xe5   :  { %v439_v33 = vpop.eup %438 }
  0xe6   :  { %v441_v34 = vpop.eup %440  ;;  %390 = vmatprep.mubr.f32.mxu1 %v439_v33 }
  0xe7   :  { %391 = vmatmul.mubr.f32.vlgmr.msra.gmra.mrb[0].mxu1 %v441_v34 }
 0x1ba   :  { %v392_v47 = vpop.f32.mrb[0].mxu1 }
 0x1bb   :  { %v214_v48 = vadd.f32 %v392_v47, %v325_v42  ;;  %v208_v49 = vpop.f32.mrb[1].mxu1 }
 0x1bc   :  { %v209_v52 = vadd.f32 %v325_v42, %v208_v49 }
 0x1bd   :  { %218 = vst [vmem:[%s567_s6 + $0x8] sm:$0xff] %v214_v48 }
 0x1be   :  { %217 = vst [vmem:[%s567_s6] sm:$0xff] %v209_v52  ;;  %v433_v53 = vpack.c.bf16 %v214_v48, %v209_v52 }
 0x1c0   :  { %434 = vmatpush3.bf16.msra.mxu0 %v433_v53 }
 0x1c3   :  { %398 = vmatmul.mubr.msk.f32.vlgmr.msra.gmra.mrb[2].mxu0 %vm243_vm7, %v242_v54 }
 0x296   :  { %v313_v55 = vpop.f32.mrb[2].mxu0 }
 0x297   :  { %317 = vst [vmem:[%s567_s6 + $0x10] sm:$0xff] %v313_v55  ;;  %v399_v56 = vpop.f32.mrb[3].mxu0 }

</bundles_post_ra>
